<compile_context>
chip_gen: v7x
topology: tpu7x:2x2x1
jax: 0.10.0
libtpu: 0.0.40
codegen_flags: <defaults>
</compile_context>

<pallas_src>
import jax
import jax.numpy as jnp
from jax.experimental import pallas as pl
from jax.experimental.pallas import tpu as pltpu

_EPS = 1e-5


def _mlp_kernel(x_ref, w1_ref, g1_ref, b1_ref, w2_ref, o_ref):
    mm_dtype = w1_ref.dtype               # bf16 (default) or f32 matmul operands
    inv_n = 1.0 / x_ref.shape[0]          # static batch size

    # ---- Linear 1 (no bias): MXU matmul, f32 accumulation ----
    x = x_ref[...].astype(mm_dtype)
    h = jnp.dot(x, w1_ref[...], preferred_element_type=jnp.float32)

    # ---- BatchNorm1d #1 (training-mode batch stats, biased variance) ----
    # Single pass over h for both reductions, affine folded into one FMA.
    mean1 = jnp.sum(h, axis=0, keepdims=True) * inv_n
    var1 = jnp.sum(h * h, axis=0, keepdims=True) * inv_n - mean1 * mean1
    scale1 = g1_ref[...] * jax.lax.rsqrt(var1 + _EPS)   # rsqrt rides the EUP slot
    shift1 = b1_ref[...] - mean1 * scale1
    # ---- ReLU fused with the BN FMA ----
    h = jnp.maximum(h * scale1 + shift1, 0.0)

    # ---- Linear 2 (no bias) ----
    z = jnp.dot(h.astype(mm_dtype), w2_ref[...], preferred_element_type=jnp.float32)

    # ---- BatchNorm1d #2 (affine=False), same folded form ----
    mean2 = jnp.sum(z, axis=0, keepdims=True) * inv_n
    var2 = jnp.sum(z * z, axis=0, keepdims=True) * inv_n - mean2 * mean2
    scale2 = jax.lax.rsqrt(var2 + _EPS)
    o_ref[...] = (z * scale2 - mean2 * scale2).astype(o_ref.dtype)


def prepare_mlp_params(w1, gamma1, beta1, w2, *, matmul_dtype=jnp.bfloat16):
    """One-time conversion from PyTorch layout to kernel layout.

    Call ONCE at init (amortized); the per-forward path then does no
    transposes, casts, or reshapes.

    w1: [D_in, D_in]  (PyTorch [out, in])   -> stored as [in, out] in matmul_dtype
    w2: [D_out, D_in] (PyTorch [out, in])   -> stored as [in, out] in matmul_dtype
    gamma1/beta1: [D_in] BatchNorm1d affine -> stored as [1, D_in] f32
    """
    d_in = w1.shape[1]
    return dict(
        w1=jnp.asarray(jnp.asarray(w1, jnp.float32).T, matmul_dtype),   # [D_in, D_in]
        w2=jnp.asarray(jnp.asarray(w2, jnp.float32).T, matmul_dtype),   # [D_in, D_out]
        gamma1=jnp.asarray(gamma1, jnp.float32).reshape(1, d_in),
        beta1=jnp.asarray(beta1, jnp.float32).reshape(1, d_in),
    )


def mlp_forward(x, params):
    """x: [N, D_in] float32; params from prepare_mlp_params. Returns [N, D_out] f32."""
    n = x.shape[0]
    d_out = params["w2"].shape[1]
    # Whole-array VMEM blocks: batch + weights easily fit VMEM at these sizes on
    # every generation (v5e/v6e/v7x); see TODO above for the large-N design.
    vmem = pl.BlockSpec(memory_space=pltpu.MemorySpace.VMEM)
    return pl.pallas_call(
        _mlp_kernel,
        out_shape=jax.ShapeDtypeStruct((n, d_out), jnp.float32),
        in_specs=[vmem] * 5,
        out_specs=vmem,
    )(x, params["w1"], params["gamma1"], params["beta1"], params["w2"])


def _reference(x, w1, gamma1, beta1, w2):
    h = x @ w1.T
    m = h.mean(0, keepdims=True)
    v = ((h - m) ** 2).mean(0, keepdims=True)
    h = (h - m) / jnp.sqrt(v + _EPS) * gamma1 + beta1
    h = jnp.maximum(h, 0.0)
    z = h @ w2.T
    m2 = z.mean(0, keepdims=True)
    v2 = ((z - m2) ** 2).mean(0, keepdims=True)
    return (z - m2) / jnp.sqrt(v2 + _EPS)


if __name__ == "__main__":
    N, INPUT_DIM, OUTPUT_DIM = 8, 32, 16

    key = jax.random.PRNGKey(0)
    kx, kw1, kw2 = jax.random.split(key, 3)

    x = jax.random.normal(kx, (N, INPUT_DIM), dtype=jnp.float32)

    # Deterministic Linear-style init: U(-1/sqrt(fan_in), 1/sqrt(fan_in)).
    bound = 1.0 / jnp.sqrt(jnp.float32(INPUT_DIM))
    w1 = jax.random.uniform(kw1, (INPUT_DIM, INPUT_DIM), jnp.float32,
                            minval=-bound, maxval=bound)      # [out, in]
    w2 = jax.random.uniform(kw2, (OUTPUT_DIM, INPUT_DIM), jnp.float32,
                            minval=-bound, maxval=bound)      # [out, in]
    gamma1 = jnp.ones((INPUT_DIM,), jnp.float32)   # BatchNorm1d affine weight
    beta1 = jnp.zeros((INPUT_DIM,), jnp.float32)   # BatchNorm1d affine bias

    ref = _reference(x, w1, gamma1, beta1, w2)

    # f32 MXU path: matches the PyTorch-style reference tightly.
    params_f32 = prepare_mlp_params(w1, gamma1, beta1, w2, matmul_dtype=jnp.float32)
    out_f32 = jax.block_until_ready(mlp_forward(x, params_f32))
    assert out_f32.shape == (N, OUTPUT_DIM)
    assert jnp.allclose(out_f32, ref, atol=1e-4, rtol=1e-4)

    # Default bf16-MXU path (preferred on v6e/v7x): matmul inputs rounded to
    # bf16, BN statistics in f32 -> looser tolerance vs. the f32 reference.
    params_bf16 = prepare_mlp_params(w1, gamma1, beta1, w2)
    out_bf16 = jax.block_until_ready(mlp_forward(x, params_bf16))
    assert out_bf16.shape == (N, OUTPUT_DIM)
    assert jnp.allclose(out_bf16, ref, atol=5e-2, rtol=5e-2)

    print("KERNEL_OK")
</pallas_src>

<mosaic_0001>
module attributes {stable_mosaic.version = 11 : i64} {
  func.func @_mlp_kernel(%arg0: memref<8x32xf32, #tpu.memory_space<vmem>>, %arg1: memref<32x32xf32, #tpu.memory_space<vmem>>, %arg2: memref<1x32xf32, #tpu.memory_space<vmem>>, %arg3: memref<1x32xf32, #tpu.memory_space<vmem>>, %arg4: memref<32x16xf32, #tpu.memory_space<vmem>>, %arg5: memref<8x16xf32, #tpu.memory_space<vmem>>) attributes {dimension_semantics = [], scalar_prefetch = 0 : i64, scratch_operands = 0 : i64, tpu.core_type = #tpu.core_type<tc>} {
    %c0 = arith.constant 0 : index
    %c0_0 = arith.constant 0 : index
    %0 = vector.load %arg0[%c0, %c0_0] : memref<8x32xf32, #tpu.memory_space<vmem>>, vector<8x32xf32>
    %c0_1 = arith.constant 0 : index
    %c0_2 = arith.constant 0 : index
    %1 = vector.load %arg1[%c0_1, %c0_2] : memref<32x32xf32, #tpu.memory_space<vmem>>, vector<32x32xf32>
    %cst = arith.constant dense<0.000000e+00> : vector<8x32xf32>
    %2 = tpu.matmul %0, %1, %cst {dimension_numbers = #tpu.dot_dimension_numbers<[1], [0], [0], [1], [0, 0, 1, 1], [], []>} : vector<8x32xf32>, vector<32x32xf32>, vector<8x32xf32> -> vector<8x32xf32>
    %cst_3 = arith.constant dense<0.000000e+00> : vector<32xf32>
    %3 = vector.multi_reduction <add>, %2, %cst_3 [0] : vector<8x32xf32> to vector<32xf32>
    %4 = vector.shape_cast %3 : vector<32xf32> to vector<1x32xf32>
    %cst_4 = arith.constant 1.250000e-01 : f32
    %5 = vector.broadcast %cst_4 : f32 to vector<1x32xf32>
    %6 = arith.mulf %4, %5 : vector<1x32xf32>
    %7 = arith.mulf %2, %2 : vector<8x32xf32>
    %cst_5 = arith.constant dense<0.000000e+00> : vector<32xf32>
    %8 = vector.multi_reduction <add>, %7, %cst_5 [0] : vector<8x32xf32> to vector<32xf32>
    %9 = vector.shape_cast %8 : vector<32xf32> to vector<1x32xf32>
    %cst_6 = arith.constant 1.250000e-01 : f32
    %10 = vector.broadcast %cst_6 : f32 to vector<1x32xf32>
    %11 = arith.mulf %9, %10 : vector<1x32xf32>
    %12 = arith.mulf %6, %6 : vector<1x32xf32>
    %13 = arith.subf %11, %12 : vector<1x32xf32>
    %c0_7 = arith.constant 0 : index
    %c0_8 = arith.constant 0 : index
    %14 = vector.load %arg2[%c0_7, %c0_8] : memref<1x32xf32, #tpu.memory_space<vmem>>, vector<1x32xf32>
    %cst_9 = arith.constant 9.99999974E-6 : f32
    %15 = vector.broadcast %cst_9 : f32 to vector<1x32xf32>
    %16 = arith.addf %13, %15 : vector<1x32xf32>
    %17 = math.rsqrt %16 : vector<1x32xf32>
    %18 = arith.mulf %14, %17 : vector<1x32xf32>
    %c0_10 = arith.constant 0 : index
    %c0_11 = arith.constant 0 : index
    %19 = vector.load %arg3[%c0_10, %c0_11] : memref<1x32xf32, #tpu.memory_space<vmem>>, vector<1x32xf32>
    %20 = arith.mulf %6, %18 : vector<1x32xf32>
    %21 = arith.subf %19, %20 : vector<1x32xf32>
    %22 = vector.broadcast %18 : vector<1x32xf32> to vector<8x32xf32>
    %23 = arith.mulf %2, %22 : vector<8x32xf32>
    %24 = vector.broadcast %21 : vector<1x32xf32> to vector<8x32xf32>
    %25 = arith.addf %23, %24 : vector<8x32xf32>
    %cst_12 = arith.constant 0.000000e+00 : f32
    %26 = vector.broadcast %cst_12 : f32 to vector<8x32xf32>
    %27 = arith.maximumf %25, %26 : vector<8x32xf32>
    %c0_13 = arith.constant 0 : index
    %c0_14 = arith.constant 0 : index
    %28 = vector.load %arg4[%c0_13, %c0_14] : memref<32x16xf32, #tpu.memory_space<vmem>>, vector<32x16xf32>
    %cst_15 = arith.constant dense<0.000000e+00> : vector<8x16xf32>
    %29 = tpu.matmul %27, %28, %cst_15 {dimension_numbers = #tpu.dot_dimension_numbers<[1], [0], [0], [1], [0, 0, 1, 1], [], []>} : vector<8x32xf32>, vector<32x16xf32>, vector<8x16xf32> -> vector<8x16xf32>
    %cst_16 = arith.constant dense<0.000000e+00> : vector<16xf32>
    %30 = vector.multi_reduction <add>, %29, %cst_16 [0] : vector<8x16xf32> to vector<16xf32>
    %31 = vector.shape_cast %30 : vector<16xf32> to vector<1x16xf32>
    %cst_17 = arith.constant 1.250000e-01 : f32
    %32 = vector.broadcast %cst_17 : f32 to vector<1x16xf32>
    %33 = arith.mulf %31, %32 : vector<1x16xf32>
    %34 = arith.mulf %29, %29 : vector<8x16xf32>
    %cst_18 = arith.constant dense<0.000000e+00> : vector<16xf32>
    %35 = vector.multi_reduction <add>, %34, %cst_18 [0] : vector<8x16xf32> to vector<16xf32>
    %36 = vector.shape_cast %35 : vector<16xf32> to vector<1x16xf32>
    %cst_19 = arith.constant 1.250000e-01 : f32
    %37 = vector.broadcast %cst_19 : f32 to vector<1x16xf32>
    %38 = arith.mulf %36, %37 : vector<1x16xf32>
    %39 = arith.mulf %33, %33 : vector<1x16xf32>
    %40 = arith.subf %38, %39 : vector<1x16xf32>
    %cst_20 = arith.constant 9.99999974E-6 : f32
    %41 = vector.broadcast %cst_20 : f32 to vector<1x16xf32>
    %42 = arith.addf %40, %41 : vector<1x16xf32>
    %43 = math.rsqrt %42 : vector<1x16xf32>
    %44 = vector.broadcast %43 : vector<1x16xf32> to vector<8x16xf32>
    %45 = arith.mulf %29, %44 : vector<8x16xf32>
    %46 = arith.mulf %33, %43 : vector<1x16xf32>
    %47 = vector.broadcast %46 : vector<1x16xf32> to vector<8x16xf32>
    %48 = arith.subf %45, %47 : vector<8x16xf32>
    %c0_21 = arith.constant 0 : index
    %c0_22 = arith.constant 0 : index
    %49 = vector.load %arg5[%c0_21, %c0_22] : memref<8x16xf32, #tpu.memory_space<vmem>>, vector<8x16xf32>
    tpu.vector_store %arg5[%c0_21, %c0_22], %48 {strides = array<i32>} : memref<8x16xf32, #tpu.memory_space<vmem>>, vector<8x16xf32>,
    return
  }
}

</mosaic_0001>

<bundles_post_ra>
// kernel: tpu_custom_call.1
= control target key start
LH: loop header
LB: loop body
LE: loop exit
PB: predicated region body
PF: predicated region fallthrough
CT: control target
= control target key end

     0   :  { %v336_v3 = vmov 0.0|0.0   ;;  %vm337_vm0 = vmmov 0   ;;  %v338_v6 = vmov 0.0   ;;  %s422_s0 = inlined_call_operand.vmem [shape: f32[8,32], index: 0, kind: input, shape index: {}]   ;;  %s423_s1 = inlined_call_operand.vmem [shape: f32[32,32], index: 1, kind: input, shape index: {}]   ;;  %s424_s2 = inlined_call_operand.vmem [shape: f32[1,32], index: 2, kind: input, shape index: {}]   ;;  %s425_s3 = inlined_call_operand.vmem [shape: f32[1,32], index: 3, kind: input, shape index: {}]   ;;  %s426_s4 = inlined_call_operand.vmem [shape: f32[32,16], index: 4, kind: input, shape index: {}]   ;;  %s427_s5 = inlined_call_operand.hbm [shape: f32[8,16], index: 5, kind: output, shape index: {}]  }
   0x1   :  { %v22_v0 = vld [vmem:[%s423_s1] sm:$0xff]  ;;  %v23_v1 = vld [vmem:[%s423_s1 + $0x8] sm:$0xff]  ;;  %v24_v2 = vld [vmem:[%s423_s1 + $0x10] sm:$0xff]  ;;  %292 = vmatprep.subr.bf16.mxu0 %v336_v3  ;;  %278 = vmatprep.mubr.msk.f32.mxu0 %vm337_vm0, %v338_v6 }
   0x2   :  { %v293_v4 = vpack.c.bf16 %v23_v1, %v22_v0  ;;  %v25_v5 = vld [vmem:[%s423_s1 + $0x18] sm:$0xff] }
   0x3   :  { %10 = vsyncpa [#allocation3], 0  ;;  %298 = vmatprep.subr.bf16.mxu1 %v336_v3  ;;  %289 = vmatprep.mubr.msk.f32.mxu1 %vm337_vm0, %v338_v6  ;;  %v296_v7 = vpack.c.bf16 %v25_v5, %v24_v2  ;;  %v21_v8 = vld [vmem:[%s422_s0] sm:$0xff]  ;;  %vm26_vm1 = vcmask 261120   ;;  %v142_v10 = vld [vmem:[%s426_s4 + $0x8] sm:$0xff]  ;;  %v127_v37 = vlaneseq  ;;  %vm218_vm2 = vcmask 130048  }
   0x4   :  { %294 = vmatpush3.bf16.msra.mxu0 %v293_v4  ;;  %v141_v9 = vld [vmem:[%s426_s4] sm:$0xff]  ;;  %v143_v12 = vld [vmem:[%s426_s4 + $0x10] sm:$0xff]  ;;  %v144_v13 = vld [vmem:[%s426_s4 + $0x18] sm:$0xff] }
   0x5   :  { %295 = vmatprep.subr.bf16.mxu0 %v336_v3  ;;  %v299_v11 = vpack.c.bf16 %v142_v10, %v141_v9  ;;  %v302_v14 = vpack.c.bf16 %v144_v13, %v143_v12  ;;  %v128_v38 = vshrl.u32 %v127_v37, 7  ;;  %v119_v39 = vld [vmem:[%s424_s2] sm:$0x1]  ;;  %s339_s2 = smov [#allocation2]  }
   0x6   :  { %v123_v43 = vld [vmem:[%s425_s3] sm:$0x1]  ;;  %s250_s3 = sshll.u32 %s339_s2, 4  ;;  %s251_s3 = int_to_ptr.vmem [resolvable:$true] %s250_s3 }
   0x7   :  { %300 = vmatpush3.bf16.msra.mxu1 %v299_v11  ;;  %v129_v40 = vsub.s32 0, %v128_v38  ;;  %s312_s12 = scalar_lea.vmem %s251_s3, 128  ;;  %p317_p1 = scmp.lt.s32.totalorder %s251_s3, %s251_s3 }
   0x8   :  { %297 = vmatpush3.bf16.msra.mxu0 %v296_v7  ;;  %301 = vmatprep.subr.bf16.mxu1 %v336_v3  ;;  %p313_p0 = scmp.ne.s32.totalorder %s251_s3, %s312_s12  ;;  %p318_p2 = scmp.lt.s32.totalorder %s312_s12, %s312_s12 }
   0xa   :  { %p319_p3 = por %p318_p2, %p317_p1 }
   0xb   :  { %279 = vmatmul.mubr.msk.f32.vlgmr.msra.gmra.mrb[0].mxu0 %vm26_vm1, %v21_v8  ;;  %303 = vmatpush3.bf16.msra.mxu1 %v302_v14 }
   0xc   :  { %p320_p4 = pnand %p319_p3, %p313_p0 }
  0xde   :  { %v96_v15 = vpop.f32.mrb[0].mxu0 }
  0xdf   :  { %v100_v16 = vsel %vm26_vm1, %v96_v15, 0.0  ;;  %v108_v17 = vmul.f32 %v96_v15, %v96_v15  ;;  %v280_v18 = vpop.f32.mrb[1].mxu0 }
  0xe0   :  { %v101_v19 = vrot.slane %v100_v16, 4 }
  0xe1   :  { %v109_v20 = vsel %vm26_vm1, %v108_v17, 0.0 }
  0xe2   :  { %v102_v21 = vadd.f32 %v101_v19, %v100_v16  ;;  %v110_v22 = vrot.slane %v109_v20, 4 }
  0xe4   :  { %v103_v23 = vrot.slane %v102_v21, 2  ;;  %v111_v24 = vadd.f32 %v110_v22, %v109_v20 }
  0xe6   :  { %v104_v25 = vadd.f32 %v103_v23, %v102_v21  ;;  %v112_v26 = vrot.slane %v111_v24, 2 }
  0xe8   :  { %v105_v27 = vrot.slane %v104_v25, 1  ;;  %v113_v28 = vadd.f32 %v112_v26, %v111_v24 }
  0xea   :  { %v106_v29 = vadd.f32 %v105_v27, %v104_v25  ;;  %v114_v30 = vrot.slane %v113_v28, 1 }
  0xec   :  { %v107_v31 = vmul.f32 0.125, %v106_v29  ;;  %v115_v32 = vadd.f32 %v114_v30, %v113_v28 }
  0xee   :  { %v116_v33 = vmul.f32 0.125, %v115_v32  ;;  %v117_v34 = vmul.f32 %v107_v31, %v107_v31 }
  0xf0   :  { %v118_v35 = vsub.f32 %v116_v33, %v117_v34 }
  0xf2   :  { %v120_v36 = vadd.f32 1e-05, %v118_v35 }
  0xf4   :  { %308 = vrsqrt.f32 %v120_v36 }
  0xfe   :  { %v309_v41 = vpop.eup %308 }
  0xff   :  { %v122_v42 = vmul.f32 %v309_v41, %v119_v39 }
 0x101   :  { %v124_v44 = vmul.f32 %v122_v42, %v107_v31  ;;  %v130_v45 = vrot.slane %v122_v42, %v129_v40 }
 0x103   :  { %v125_v46 = vsub.f32 %v123_v43, %v124_v44  ;;  %v132_v47 = vmul.f32 %v130_v45, %v96_v15 }
 0x105   :  { %v137_v48 = vrot.slane %v125_v46, %v129_v40 }
 0x107   :  { %v139_v49 = vadd.f32 %v137_v48, %v132_v47 }
 0x109   :  { %v140_v50 = vmax.f32 %v139_v49, 0.0 }
 0x10b   :  { %290 = vmatmul.mubr.msk.f32.vlgmr.msra.gmra.mrb[0].mxu1 %vm26_vm1, %v140_v50 }
 0x1de   :  { %v214_v51 = vpop.f32.mrb[0].mxu1 }
 0x1df   :  { %v219_v52 = vsel %vm218_vm2, %v214_v51, 0.0  ;;  %v227_v53 = vmul.f32 %v214_v51, %v214_v51  ;;  %v291_v54 = vpop.f32.mrb[1].mxu1 }
 0x1e0   :  { %v220_v55 = vrot.slane %v219_v52, 4 }
 0x1e1   :  { %v228_v56 = vsel %vm218_vm2, %v227_v53, 0.0 }
 0x1e2   :  { %v221_v57 = vadd.f32 %v220_v55, %v219_v52  ;;  %v229_v58 = vrot.slane %v228_v56, 4 }
 0x1e4   :  { %v222_v59 = vrot.slane %v221_v57, 2  ;;  %v230_v60 = vadd.f32 %v229_v58, %v228_v56 }
 0x1e6   :  { %v223_v61 = vadd.f32 %v222_v59, %v221_v57  ;;  %v231_v62 = vrot.slane %v230_v60, 2 }
 0x1e8   :  { %v224_v63 = vrot.slane %v223_v61, 1  ;;  %v232_v0 = vadd.f32 %v231_v62, %v230_v60 }
 0x1ea   :  { %v225_v1 = vadd.f32 %v224_v63, %v223_v61  ;;  %v233_v2 = vrot.slane %v232_v0, 1 }
 0x1ec   :  { %v226_v3 = vmul.f32 0.125, %v225_v1  ;;  %v234_v4 = vadd.f32 %v233_v2, %v232_v0 }
 0x1ee   :  { %v235_v5 = vmul.f32 0.125, %v234_v4  ;;  %v236_v6 = vmul.f32 %v226_v3, %v226_v3 }
 0x1f0   :  { %v237_v7 = vsub.f32 %v235_v5, %v236_v6 }
 0x1f2   :  { %v238_v8 = vadd.f32 1e-05, %v237_v7 }
 0x1f4   :  { %310 = vrsqrt.f32 %v238_v8 }
 0x1fe   :  { %v311_v9 = vpop.eup %310 }
 0x1ff   :  { %v240_v10 = vmul.f32 %v311_v9, %v214_v51  ;;  %v241_v11 = vmul.f32 %v311_v9, %v226_v3 }
 0x201   :  { %v242_v12 = vsub.f32 %v240_v10, %v241_v11 }
 0x203   :  { %243 = vst.msk [vmem:[#allocation2] sm:$0xff] %vm218_vm2, %v242_v12 }
 0x204   :  { %323 = shalt.err (!%p320_p4)
}
 0x205   :  { %s324_s15 = scalar_lea.hbm %s427_s5, 128 }
 0x206   :  { %p325_p5 = scmp.ne.s32.totalorder %s427_s5, %s324_s15  ;;  %p328_p6 = scmp.lt.u32.totalorder %s324_s15, %s427_s5 }
 0x208   :  { %p330_p7 = pnand %p328_p6, %p325_p5 }
 0x20a   :  { %333 = shalt.err (!%p330_p7)
}
 0x20b   :  { %253 = dma.vmem_to_hbm [thread:$0]  %s251_s3, 128, %s427_s5, [#allocation3]  }
 0x20c   :  { %334 = dma.done.wait [#allocation3], 128  }
 0x20d   :  { %335 = vsyncadd [#allocation3], 4294967168 }
 0x20e   :  { %257 = vsyncpa [#allocation3], 1 }

</bundles_post_ra>
